<compile_context>
chip_gen: v7x
topology: tpu7x:2x2x1
jax: 0.10.0
libtpu: 0.0.40
codegen_flags: <defaults>
</compile_context>

<pallas_src>
import jax
import jax.numpy as jnp
from jax.experimental import pallas as pl
from jax.experimental.pallas import tpu as pltpu


def _round_up(x: int, m: int) -> int:
    return ((x + m - 1) // m) * m


def _srpe_kernel(idx_ref, emb_ref, out_ref):
    # idx_ref: (TR, 128)    int8   -- vocab index for each output lane
    #                                 (each index repeated d_pad times)
    # emb_ref: (VOCAB, 128) float  -- emb rows tiled along lanes:
    #                                 emb_lanes[k, l] = emb[k, l % d_pad]
    # out_ref: (TR, 128)    float  -- lane-dense gathered output slab
    idx = idx_ref[...].astype(jnp.int32)       # widen once per tile
    emb = emb_ref[...]                         # (VOCAB, 128)
    vocab = emb.shape[0]                       # static Python int -> unrolled

    # Start from emb[0]; padded slots (index 0) are sliced off by the wrapper.
    acc = jnp.broadcast_to(emb[0:1, :], out_ref.shape)
    for k in range(1, vocab):                  # tiny vocab: VPU selects
        acc = jnp.where(idx == k, emb[k:k + 1, :], acc)
    out_ref[...] = acc


def srpe_forward(sdist: jax.Array, emb_table: jax.Array, *, tile_rows: int = 2048):
    """Embedding lookup: returns emb_table[sdist] with shape (V, V, d)."""
    V1, V2 = sdist.shape
    vocab, d = emb_table.shape
    assert d <= 128      # TODO(synk): d > 128 path (multi-row-per-embedding) not implemented
    assert vocab <= 127  # int8 index stream
    n = V1 * V2
    dtype = emb_table.dtype

    # Pad d up to the smallest divisor of 128 so each 128-lane output row
    # holds an integer number of embeddings (lane-dense stores).
    d_pad = d
    while 128 % d_pad != 0:
        d_pad += 1
    g = 128 // d_pad                           # embeddings per 128-lane row

    ROW_ALIGN = 32                             # int8 sublane tile
    rows = -(-n // g)                          # ceil(n / g)
    # >= 2 grid steps when there is enough work (v7x megacore); tile derived
    # from cdiv so tail padding never exceeds ~one ROW_ALIGN-rounded tile.
    num_tiles = max(-(-rows // tile_rows), 2 if rows >= 2 * ROW_ALIGN else 1)
    tr = _round_up(-(-rows // num_tiles), ROW_ALIGN)
    rows_pad = tr * num_tiles
    n_slots = rows_pad * g

    # int8 lane-dense index slab: each index repeated d_pad times along the
    # flat order (broadcast + reshape — fusion-friendly), padding slots use 0.
    idx_flat = jnp.pad(sdist.reshape(-1).astype(jnp.int8), (0, n_slots - n))
    idx_slab = jnp.broadcast_to(idx_flat[:, None], (n_slots, d_pad)).reshape(rows_pad, 128)

    # Embedding rows tiled along lanes: emb_lanes[k, l] = emb_pad[k, l % d_pad].
    emb_pad = jnp.pad(emb_table, ((0, 0), (0, d_pad - d)))
    emb_lanes = jnp.tile(emb_pad, (1, g))      # (vocab, 128)

    out_slab = pl.pallas_call(
        _srpe_kernel,
        out_shape=jax.ShapeDtypeStruct((rows_pad, 128), dtype),
        grid_spec=pltpu.PrefetchScalarGridSpec(
            num_scalar_prefetch=0,
            grid=(num_tiles,),
            in_specs=[
                pl.BlockSpec((tr, 128), lambda i: (i, 0)),       # int8 index tile
                pl.BlockSpec((vocab, 128), lambda i: (0, 0)),    # full (tiny) table
            ],
            out_specs=pl.BlockSpec((tr, 128), lambda i: (i, 0)),
        ),
        compiler_params=pltpu.CompilerParams(
            dimension_semantics=("parallel",),
            allow_input_fusion=[True, False],   # let XLA fuse the slab producer
        ),
    )(idx_slab, emb_lanes)

    # Unpack lane-dense slab -> (N, d). Fast path is a free reshape (no copy).
    if rows_pad == rows and d_pad == d and n_slots == n:
        out = out_slab.reshape(n, d)
    else:
        out = out_slab.reshape(n_slots, d_pad)[:n, :d]
    return out.reshape(V1, V2, d)


if __name__ == "__main__":
    # Config (small, consistent with STPGCN's SRPE):
    V = 16        # number of spatial nodes -> SDist is (V, V)
    alpha = 4     # max spatial distance    -> embedding vocab = alpha + 1
    d = 32        # embedding dim

    key = jax.random.PRNGKey(0)
    k_idx, k_emb = jax.random.split(key)

    # Deterministic "spatial_distance" matrix with values in [0, alpha]
    sdist = jax.random.randint(k_idx, (V, V), minval=0, maxval=alpha + 1,
                               dtype=jnp.int32)
    # Deterministic embedding weights (nn.Embedding(alpha+1, d))
    emb_table = jax.random.normal(k_emb, (alpha + 1, d), dtype=jnp.float32)

    out = srpe_forward(sdist, emb_table)
    out = jax.block_until_ready(out)

    # Reference: plain JAX gather (same semantics as nn.Embedding lookup)
    ref = emb_table[sdist]
    assert out.shape == (V, V, d)
    assert jnp.allclose(out, ref, atol=0.0), "mismatch vs reference gather"

    print("KERNEL_OK")
</pallas_src>

<mosaic_0001>
module attributes {stable_mosaic.version = 11 : i64} {
  func.func @_srpe_kernel(%arg0: i32, %arg1: memref<32x128xi8, #tpu.memory_space<vmem>>, %arg2: memref<5x128xf32, #tpu.memory_space<vmem>>, %arg3: memref<32x128xf32, #tpu.memory_space<vmem>>) attributes {dimension_semantics = [#tpu.dimension_semantics<parallel>], iteration_bounds = array<i64: 2>, scalar_prefetch = 0 : i64, scratch_operands = 0 : i64, tpu.core_type = #tpu.core_type<tc>, window_params = [{transform_indices = @transform_0, window_bounds = array<i64: 32, 128>}, {pipeline_mode = #tpu.pipeline_mode<synchronous>, transform_indices = @transform_1, window_bounds = array<i64: 5, 128>}, {transform_indices = @transform_2, window_bounds = array<i64: 32, 128>}]} {
    %c0 = arith.constant 0 : index
    %c0_0 = arith.constant 0 : index
    %0 = vector.load %arg1[%c0, %c0_0] : memref<32x128xi8, #tpu.memory_space<vmem>>, vector<32x128xi8>
    %1 = arith.extsi %0 : vector<32x128xi8> to vector<32x128xi32>
    %c0_1 = arith.constant 0 : index
    %c0_2 = arith.constant 0 : index
    %2 = vector.load %arg2[%c0_1, %c0_2] : memref<5x128xf32, #tpu.memory_space<vmem>>, vector<5x128xf32>
    %3 = vector.extract_strided_slice %2 {offsets = [0, 0], sizes = [1, 128], strides = [1, 1]} : vector<5x128xf32> to vector<1x128xf32>
    %4 = vector.shape_cast %3 : vector<1x128xf32> to vector<1x128xf32>
    %5 = vector.broadcast %4 : vector<1x128xf32> to vector<32x128xf32>
    %c1_i32 = arith.constant 1 : i32
    %6 = vector.broadcast %c1_i32 : i32 to vector<32x128xi32>
    %7 = arith.cmpi eq, %1, %6 : vector<32x128xi32>
    %8 = vector.extract_strided_slice %2 {offsets = [1, 0], sizes = [1, 128], strides = [1, 1]} : vector<5x128xf32> to vector<1x128xf32>
    %9 = vector.shape_cast %8 : vector<1x128xf32> to vector<1x128xf32>
    %10 = vector.broadcast %9 : vector<1x128xf32> to vector<32x128xf32>
    %11 = arith.select %7, %10, %5 : vector<32x128xi1>, vector<32x128xf32>
    %c2_i32 = arith.constant 2 : i32
    %12 = vector.broadcast %c2_i32 : i32 to vector<32x128xi32>
    %13 = arith.cmpi eq, %1, %12 : vector<32x128xi32>
    %14 = vector.extract_strided_slice %2 {offsets = [2, 0], sizes = [1, 128], strides = [1, 1]} : vector<5x128xf32> to vector<1x128xf32>
    %15 = vector.shape_cast %14 : vector<1x128xf32> to vector<1x128xf32>
    %16 = vector.broadcast %15 : vector<1x128xf32> to vector<32x128xf32>
    %17 = arith.select %13, %16, %11 : vector<32x128xi1>, vector<32x128xf32>
    %c3_i32 = arith.constant 3 : i32
    %18 = vector.broadcast %c3_i32 : i32 to vector<32x128xi32>
    %19 = arith.cmpi eq, %1, %18 : vector<32x128xi32>
    %20 = vector.extract_strided_slice %2 {offsets = [3, 0], sizes = [1, 128], strides = [1, 1]} : vector<5x128xf32> to vector<1x128xf32>
    %21 = vector.shape_cast %20 : vector<1x128xf32> to vector<1x128xf32>
    %22 = vector.broadcast %21 : vector<1x128xf32> to vector<32x128xf32>
    %23 = arith.select %19, %22, %17 : vector<32x128xi1>, vector<32x128xf32>
    %c4_i32 = arith.constant 4 : i32
    %24 = vector.broadcast %c4_i32 : i32 to vector<32x128xi32>
    %25 = arith.cmpi eq, %1, %24 : vector<32x128xi32>
    %26 = vector.extract_strided_slice %2 {offsets = [4, 0], sizes = [1, 128], strides = [1, 1]} : vector<5x128xf32> to vector<1x128xf32>
    %27 = vector.shape_cast %26 : vector<1x128xf32> to vector<1x128xf32>
    %28 = vector.broadcast %27 : vector<1x128xf32> to vector<32x128xf32>
    %29 = arith.select %25, %28, %23 : vector<32x128xi1>, vector<32x128xf32>
    %c0_3 = arith.constant 0 : index
    %c0_4 = arith.constant 0 : index
    %30 = vector.load %arg3[%c0_3, %c0_4] : memref<32x128xf32, #tpu.memory_space<vmem>>, vector<32x128xf32>
    tpu.vector_store %arg3[%c0_3, %c0_4], %29 {strides = array<i32>} : memref<32x128xf32, #tpu.memory_space<vmem>>, vector<32x128xf32>,
    return
  }
  func.func @transform_0(%arg0: i32) -> (i32, i32) {
    %c0_i32 = arith.constant 0 : i32
    %c0_i32_0 = arith.constant 0 : i32
    return %arg0, %c0_i32 : i32, i32
  }
  func.func @transform_1(%arg0: i32) -> (i32, i32) {
    %c0_i32 = arith.constant 0 : i32
    %c0_i32_0 = arith.constant 0 : i32
    %c0_i32_1 = arith.constant 0 : i32
    return %c0_i32, %c0_i32_0 : i32, i32
  }
  func.func @transform_2(%arg0: i32) -> (i32, i32) {
    %c0_i32 = arith.constant 0 : i32
    %c0_i32_0 = arith.constant 0 : i32
    return %arg0, %c0_i32 : i32, i32
  }
}

</mosaic_0001>

<bundles_post_ra>
// kernel: tpu_custom_call.1
= control target key start
LH: loop header
LB: loop body
LE: loop exit
PB: predicated region body
PF: predicated region fallthrough
CT: control target
= control target key end

     0   :  { %7 = vsyncpa [#allocation3], 0  ;;  %s761_s0 = inlined_call_operand.hbm [shape: s8[64,128], index: 0, kind: input, shape index: {}]   ;;  %s762_s1 = inlined_call_operand.hbm [shape: f32[5,128], index: 1, kind: input, shape index: {}]   ;;  %s763_s2 = inlined_call_operand.hbm [shape: f32[64,128], index: 2, kind: output, shape index: {}]  }
   0x1   :  { %9 = vsyncpa [#allocation3 + $0x1], 0 }
   0x2   :  { %10 = vsyncpa [#allocation6], 0 }
   0x3   :  { %11 = vsyncpa [#allocation4], 0 }
   0x4   :  { %13 = vsyncpa [#allocation4 + $0x1], 0  ;;  %s557_s9 = smov 0   ;;  %s559_s10 = smov 0  }
   0x5   :  { %s561_s11 = smov 0   ;;  %s563_s12 = smov 0  }
   0x6 LB: > { %s578_s13 = sadd.s32 4294967295, %s535_s12   ;;  %s332_s14 = sadd.s32 4294967294, %s535_s12   ;;  %s535_s12 = sphi %s563_s12, %s787_s12   ;;  %s531_s11 = sphi %s561_s11, %s786_s11   ;;  %s527_s10 = sphi %s559_s10, %s785_s10   ;;  %s523_s9 = sphi %s557_s9, %s784_s9  }
   0x7   : > { %p39_p0 = scmp.ne.s32.totalorder %s527_s10, %s523_s9  ;;  %p764_p1 = scmp.eq.s32.totalorder %s578_s13, 0 }
   0x8   : > { %p90_p3 = scmp.eq.s32.totalorder %s332_s14, 1  ;;  %p333_p5 = scmp.ge.s32.totalorder %s535_s12, 1 }
   0x9   : > { %p587_p4 = por %p764_p1, %p39_p0  ;;  %p97_p7 = scmp.lt.s32.totalorder %s535_s12, 3 }
   0xa   : > { %p592_p6 = por %p90_p3, %p39_p0  ;;  %s537_s18 = smov [#allocation5]  }
   0xb   : > { %s767_s15 = scalar_select %p587_p4, 1, 0 }
   0xc   : > { %s768_s16 = scalar_select %p592_p6, 1, 0 }
   0xd   : > { %p597_p8 = pnand %p333_p5, %p97_p7  ;;  %s110_s19 = sshll.u32 %s537_s18, 4  ;;  %s111_s19 = int_to_ptr.vmem [resolvable:$true] %s110_s19 }
   0xe   : > { %s605_s20 = sadd.s32 1, %s535_s12   ;;  %s26_s24 = sadd.s32 1, %s531_s11 }
   0xf   : > { %s769_s17 = scalar_select %p597_p8, 1, 0 }
  0x10   : > { %p356_p10 = pneg %p597_p8  ;;  %s23_s22 = ssub.s32 %s535_s12, %s605_s20 }
  0x11   : > { %p615_p12 = scmp.eq.s32.totalorder %s23_s22, 0  ;;  %s407_s27 = scalar_lea.hbm %s762_s1, 128 }
  0x12   : > { %p609_p11 = pnand %p356_p10, %p764_p1  ;;  %p408_p0 = scmp.ne.s32.totalorder %s762_s1, %s407_s27 }
  0x13   : > { %s771_s23 = scalar_select %p615_p12, 1, 0 }
  0x14   : > { %p409_p3 = pneg %p609_p11  ;;  %p414_p10 = scmp.lt.u32.totalorder %s407_s27, %s762_s1 }
  0x16   : > { %p410_p5 = pnand %p409_p3, %p408_p0 }
  0x18   : > { %p411_p7 = pneg %p410_p5 }
  0x1a   : > { %p416_p9 = pnand %p414_p10, %p411_p7 }
  0x1c   : > { %419 = shalt.err (!%p416_p9)
}
  0x1d   : > { %s420_s4 = scalar_lea.vmem %s111_s19, 128  ;;  %p428_p6 = scmp.lt.s32.totalorder %s111_s19, %s111_s19 }
  0x1e   : > { %p421_p1 = scmp.ne.s32.totalorder %s111_s19, %s420_s4  ;;  %p429_p4 = scmp.lt.s32.totalorder %s420_s4, %s420_s4 }
  0x20   : > { %p423_p2 = pnand %p421_p1, %p409_p3  ;;  %p430_p8 = por %p429_p4, %p428_p6 }
  0x22   : > { %p424_p13 = pneg %p423_p2 }
  0x24   : > { %p431_p12 = pnand %p430_p8, %p424_p13 }
  0x26   : > { %434 = shalt.err (!%p431_p12)
}
  0x27   : > { %359 = dma.hbm_to_vmem [thread:$0]  (!%p609_p11), %s762_s1, 128, %s111_s19, [#allocation6]  }
  0x28   : > { %p772_p1 = scmp.ne.s32.totalorder %s771_s23, 0  ;;  %p34_p2 = scmp.eq.s32.totalorder %s535_s12, 0 }
  0x29   : > { %p773_p4 = scmp.ne.s32.totalorder %s531_s11, %s527_s10  ;;  %p774_p6 = scmp.eq.s32.totalorder %s578_s13, 1 }
  0x2a   : > { %s641_s7 = scalar_select %p772_p1, %s531_s11, %s26_s24  }
  0x2b   : > { %p649_p8 = por %p774_p6, %p773_p4  ;;  %p369_p9 = scmp.lt.s32.totalorder %s535_s12, 2 }
  0x2c   : > { %s121_s14 = sand.u32 1, %s531_s11   ;;  %p776_p12 = pmov %p773_p4 }
  0x2d   : > { %s336_s18 = sshll.u32 %s121_s14, 3  ;;  %s337_s21 = sshll.u32 %s535_s12, 7 }
  0x2e   : > { %p35_p13 = por %p34_p2, %p776_p12  ;;  %s662_s19 = scalar_lea.hbm %s761_s0, %s337_s21 }
  0x2f   : > { %s125_s23 = scalar_lea.vmem [#allocation2], %s336_s18  ;;  %s122_s27 = scalar_lea.sflag [#allocation3], %s121_s14 }
  0x30   : > { %s132_s24 = sshll.u32 %s125_s23, 4  ;;  %p664_p11 = pnand %p369_p9, %p35_p13  ;;  %s668_s24 = int_to_ptr.vmem [resolvable:$true] %s132_s24 }
  0x31   : > { %s435_s28 = scalar_lea.hbm %s662_s19, 128  ;;  %s440_s3 = scalar_lea.hbm %s761_s0, 256 }
  0x32   : > { %p436_p0 = scmp.ne.s32.totalorder %s662_s19, %s435_s28  ;;  %p437_p3 = pneg %p664_p11 }
  0x33   : > { %p441_p10 = scmp.lt.u32.totalorder %s662_s19, %s761_s0  ;;  %p442_p1 = scmp.lt.u32.totalorder %s440_s3, %s435_s28 }
  0x34   : > { %p438_p5 = pnand %p437_p3, %p436_p0  ;;  %p444_p4 = scmp.lt.u32.totalorder %s435_s28, %s662_s19 }
  0x35   : > { %p443_p2 = por %p442_p1, %p441_p10 }
  0x36   : > { %p439_p7 = pneg %p438_p5 }
  0x37   : > { %p445_p6 = por %p444_p4, %p443_p2 }
  0x39   : > { %p446_p9 = pnand %p445_p6, %p439_p7 }
  0x3b   : > { %449 = shalt.err (!%p446_p9)
}
  0x3c   : > { %s450_s6 = scalar_lea.vmem %s668_s24, 128  ;;  %s538_s14 = smov [#allocation2]  }
  0x3d   : > { %p451_p12 = scmp.ne.s32.totalorder %s668_s24, %s450_s6  ;;  %s455_s18 = sshll.u32 %s538_s14, 4  ;;  %s456_s18 = int_to_ptr.vmem [resolvable:$false] %s455_s18 }
  0x3e   : > { %s457_s21 = scalar_lea.vmem %s456_s18, 256  ;;  %p458_p5 = scmp.lt.s32.totalorder %s668_s24, %s456_s18 }
  0x3f   : > { %p453_p13 = pnand %p451_p12, %p437_p3  ;;  %p459_p10 = scmp.lt.s32.totalorder %s457_s21, %s450_s6 }
  0x41   : > { %p454_p0 = pneg %p453_p13  ;;  %p460_p1 = por %p459_p10, %p458_p5 }
  0x43   : > { %p461_p2 = pnand %p460_p1, %p454_p0 }
  0x45   : > { %464 = shalt.err (!%p461_p2)
}
  0x46   : > { %363 = dma.hbm_to_vmem [thread:$0]  (!%p664_p11), %s662_s19, 128, %s668_s24, %s122_s27  }
  0x47   : > { %p778_p7 = scmp.ne.s32.totalorder %s769_s17, 0 }
  0x48   : > { %s698_s22 = sand.u32 (!%p778_p7), 1, %s527_s10   ;;  %p779_p3 = scmp.ne.s32.totalorder (!%p778_p7), %s767_s15, 0 }
  0x49   : > { %141 = sbr.rel (%p778_p7) target bundleno = 115 (0x73), region = 28  ;;  %s339_s25 = sshll.u32 (!%p778_p7), %s698_s22, 3 }
  0x4a   : > { %s144_s23 = scalar_lea.sflag (!%p778_p7), [#allocation3], %s698_s22  ;;  %s147_s28 = scalar_lea.vmem (!%p778_p7), [#allocation2], %s339_s25 }
  0x50   : > { %510 = dma.done.wait (%p779_p3), %s144_s23, 128  }
  0x51   : > { %512 = vsyncadd (%p779_p3), %s144_s23, 4294967168  ;;  %p780_p4 = scmp.eq.s32.totalorder %s578_s13, 0 }
  0x53   : > { %514 = dma.done.wait (%p780_p4), [#allocation6], 128   ;;  %p781_p11 = pmov %p780_p4 }
  0x54   : > { %v179_v0 = vlaneseq  ;;  %v173_v7 = vld [vmem:[%s147_s28] sm:$0xff]  ;;  %v178_v8 = vld [vmem:[#allocation5] sm:$0x1f]  ;;  %s341_s15 = sshll.u32 %s698_s22, 5  ;;  %s347_s24 = sshll.u32 %s578_s13, 9 }
  0x55   : > { %516 = vsyncadd (%p781_p11), [#allocation6], 4294967168  ;;  %v174_v9 = vunpack.c.0.s8 %v173_v7  ;;  %v175_v15 = vunpack.c.1.s8 %v173_v7  ;;  %v176_v16 = vunpack.c.2.s8 %v173_v7  ;;  %s171_s17 = scalar_lea.vmem [#allocation7], %s341_s15  ;;  %v177_v28 = vunpack.c.3.s8 %v173_v7  ;;  %s717_s29 = scalar_lea.hbm %s763_s2, %s347_s24 }
  0x56   : > { %v180_v1 = vshrl.u32 %v179_v0, 7  ;;  %s249_s19 = sshll.u32 %s171_s17, 4  ;;  %s236_s13 = scalar_lea.sflag [#allocation4], %s698_s22  ;;  %s712_s19 = int_to_ptr.vmem [resolvable:$true] %s249_s19 }
  0x57   : > { %vm183_vm0 = vcmp.eq.s32.totalorder %v174_v9, 1  ;;  %vm195_vm1 = vcmp.eq.s32.totalorder %v174_v9, 2  ;;  %vm207_vm2 = vcmp.eq.s32.totalorder %v174_v9, 3  ;;  %vm219_vm3 = vcmp.eq.s32.totalorder %v174_v9, 4  ;;  %s465_s30 = scalar_lea.vmem %s712_s19, 512  ;;  %s539_s3 = smov [#allocation7]  }
  0x58   : > { %v181_v2 = vsub.s32 0, %v180_v1  ;;  %v189_v3 = vsub.s32 1, %v180_v1  ;;  %v201_v4 = vsub.s32 2, %v180_v1  ;;  %v213_v5 = vsub.s32 3, %v180_v1  ;;  %p466_p6 = scmp.ne.s32.totalorder %s712_s19, %s465_s30  ;;  %s469_s4 = sshll.u32 %s539_s3, 4  ;;  %s470_s4 = int_to_ptr.vmem [resolvable:$false] %s469_s4 }
  0x59   : > { %v225_v6 = vsub.s32 4, %v180_v1  ;;  %vm184_vm4 = vcmp.eq.s32.totalorder %v175_v15, 1  ;;  %vm196_vm5 = vcmp.eq.s32.totalorder %v175_v15, 2  ;;  %vm208_vm6 = vcmp.eq.s32.totalorder %v175_v15, 3  ;;  %s471_s5 = scalar_lea.vmem %s470_s4, 1024  ;;  %p472_p13 = scmp.lt.s32.totalorder %s712_s19, %s470_s4 }
  0x5a   : > { %v182_v10 = vrot.slane %v178_v8, %v181_v2  ;;  %v190_v11 = vrot.slane %v178_v8, %v189_v3  ;;  %v202_v12 = vrot.slane %v178_v8, %v201_v4  ;;  %v214_v13 = vrot.slane %v178_v8, %v213_v5  ;;  %p467_p9 = pnand %p466_p6, %p649_p8  ;;  %p473_p0 = scmp.lt.s32.totalorder %s471_s5, %s465_s30 }
  0x5b   : > { %v226_v14 = vrot.slane %v178_v8, %v225_v6  ;;  %vm220_vm7 = vcmp.eq.s32.totalorder %v175_v15, 4  ;;  %vm185_vm8 = vcmp.eq.s32.totalorder %v176_v16, 1  ;;  %vm197_vm9 = vcmp.eq.s32.totalorder %v176_v16, 2 }
  0x5c   : > { %v191_v17 = vsel %vm183_vm0, %v190_v11, %v182_v10  ;;  %v192_v19 = vsel %vm184_vm4, %v190_v11, %v182_v10  ;;  %v193_v22 = vsel %vm185_vm8, %v190_v11, %v182_v10  ;;  %vm209_vm10 = vcmp.eq.s32.totalorder %v176_v16, 3  ;;  %p468_p12 = pneg %p467_p9  ;;  %p474_p5 = por %p473_p0, %p472_p13 }
  0x5d   : > { %v203_v18 = vsel %vm195_vm1, %v202_v12, %v191_v17  ;;  %v204_v21 = vsel %vm196_vm5, %v202_v12, %v192_v19  ;;  %v205_v25 = vsel %vm197_vm9, %v202_v12, %v193_v22  ;;  %vm221_vm11 = vcmp.eq.s32.totalorder %v176_v16, 4 }
  0x5e   : > { %v215_v20 = vsel %vm207_vm2, %v214_v13, %v203_v18  ;;  %v216_v24 = vsel %vm208_vm6, %v214_v13, %v204_v21  ;;  %v217_v27 = vsel %vm209_vm10, %v214_v13, %v205_v25  ;;  %vm186_vm12 = vcmp.eq.s32.totalorder %v177_v28, 1  ;;  %p475_p10 = pnand %p474_p5, %p468_p12 }
  0x5f   : > { %v227_v23 = vsel %vm219_vm3, %v226_v14, %v215_v20  ;;  %v228_v26 = vsel %vm220_vm7, %v226_v14, %v216_v24  ;;  %v229_v29 = vsel %vm221_vm11, %v226_v14, %v217_v27  ;;  %vm198_vm13 = vcmp.eq.s32.totalorder %v177_v28, 2 }
  0x60   : > { %231 = vst [vmem:[%s171_s17] sm:$0xff] %v227_v23  ;;  %232 = vst [vmem:[%s171_s17 + $0x8] sm:$0xff] %v228_v26  ;;  %vm210_vm14 = vcmp.eq.s32.totalorder %v177_v28, 3  ;;  %v194_v30 = vsel %vm186_vm12, %v190_v11, %v182_v10  ;;  %vm222_vm15 = vcmp.eq.s32.totalorder %v177_v28, 4 }
  0x61   : > { %233 = vst [vmem:[%s171_s17 + $0x10] sm:$0xff] %v229_v29  ;;  %v206_v31 = vsel %vm198_vm13, %v202_v12, %v194_v30 }
  0x62   : > { %v218_v32 = vsel %vm210_vm14, %v214_v13, %v206_v31 }
  0x63   : > { %v230_v33 = vsel %vm222_vm15, %v226_v14, %v218_v32 }
  0x64   : > { %234 = vst [vmem:[%s171_s17 + $0x18] sm:$0xff] %v230_v33 }
  0x65   : > { %478 = shalt.err (!%p475_p10)
}
  0x66   : > { %s479_s6 = scalar_lea.hbm %s717_s29, 512  ;;  %s483_s21 = scalar_lea.hbm %s763_s2, 1024 }
  0x67   : > { %p480_p1 = scmp.ne.s32.totalorder %s717_s29, %s479_s6  ;;  %p484_p3 = scmp.lt.u32.totalorder %s717_s29, %s763_s2 }
  0x68   : > { %p485_p4 = scmp.lt.u32.totalorder %s483_s21, %s479_s6  ;;  %p487_p6 = scmp.lt.u32.totalorder %s479_s6, %s717_s29 }
  0x69   : > { %p481_p2 = pnand %p480_p1, %p649_p8 }
  0x6a   : > { %p486_p11 = por %p485_p4, %p484_p3 }
  0x6b   : > { %p482_p7 = pneg %p481_p2 }
  0x6c   : > { %p488_p9 = por %p487_p6, %p486_p11 }
  0x6e   : > { %p489_p12 = pnand %p488_p9, %p482_p7 }
  0x70   : > { %492 = shalt.err (!%p489_p12)
}
  0x71   : > { %s540_s28 = smov 128   ;;  %s541_s15 = smov 8  }
  0x72   : > { %354 = dma.vmem_to_hbm [thread:$0]  (%p649_p8), %s712_s19, 512, %s717_s29, %s236_s13, %s540_s28, %s540_s28, %s541_s15  }
  0x73 PF: > { %s264_s17 = sand.u32 1, %s523_s9   ;;  %p782_p13 = scmp.ne.s32.totalorder %s768_s16, 0 }
  0x74   : > { %p783_p0 = scmp.ge.s32.totalorder %s535_s12, 2  ;;  %s265_s24 = scalar_lea.sflag [#allocation4], %s264_s17 }
  0x76   : > { %p365_p5 = pnand %p783_p0, %p782_p13 }
  0x78   : > { %518 = dma.done.wait (!%p365_p5), %s265_s24, 512  }
  0x79   : > { %520 = vsyncadd (!%p365_p5), %s265_s24, 4294966784  ;;  %p16_p10 = scmp.ge.s32.totalorder %s605_s20, 4   ;;  %s784_s9 = smov %s527_s10 }
  0x7a   : > { %s785_s10 = smov %s531_s11  ;;  %s786_s11 = smov %s641_s7 }
  0x7b   : > { %s787_s12 = smov %s605_s20  ;;  %18 = sbr.rel (!%p16_p10) target bundleno = 6 (0x6), region = 77 }
  0x82   :  { %270 = vsyncpa [#allocation3], 1 }
  0x83   :  { %272 = vsyncpa [#allocation3 + $0x1], 1 }
  0x84   :  { %273 = vsyncpa [#allocation6], 1 }
  0x85   :  { %274 = vsyncpa [#allocation4], 1 }
  0x86   :  { %276 = vsyncpa [#allocation4 + $0x1], 1 }

</bundles_post_ra>
